<compile_context>
chip_gen: v7x
topology: tpu7x:2x2x1
jax: 0.10.0
libtpu: 0.0.40
codegen_flags: <defaults>
</compile_context>

<pallas_src>
import jax
import jax.numpy as jnp
from jax.experimental import pallas as pl
from jax.experimental.pallas import tpu as pltpu


# ----------------------------- glue helpers (plain JAX, tiny tensors) -----------------------------

def convert_index(x, in_size, out_size, align_corners: bool):
    x = x.astype(jnp.float32)
    if align_corners:
        return (out_size - 1.0) / (in_size - 1.0) * x
    return out_size / in_size * (x + 0.5) - 0.5


def compute_pixel_idx_1d(idx_d, idx_max_d, size_d, padding_d, clipped=False):
    # idx_d: [N] int32 patch index along one dim.
    assert size_d % idx_max_d == 0
    patch = size_d // idx_max_d
    rng = jnp.arange(-padding_d, patch + padding_d, dtype=jnp.int32)
    pix = idx_d[:, None] * patch + rng[None, :]                 # [N, patch + 2*pad]
    mask = jnp.logical_and(pix >= 0, pix < size_d)
    if clipped:
        pix = jnp.clip(pix, 0, size_d - 1)
    return pix, mask


def compute_pixel_idx_3d(idx, idx_max, sizes, padding, clipped=False):
    res = [compute_pixel_idx_1d(idx[:, d], idx_max[d], sizes[d], padding[d], clipped)
           for d in range(3)]
    return [r[0] for r in res], [r[1] for r in res]


# ----------------------------- Pallas kernel (hot path) -----------------------------

def _fused_upsample_kernel(m1_ref, x_ref, kw2_ref, o_ref):
    # m1_ref : [tl2, L1]      (block of w0 (x) w1 rows)
    # x_ref  : [L1,  W1*C]    (whole input patch for this batch)
    # kw2_ref: [W1*C, W2*C]   (w2 (x) I_C for this batch)
    # o_ref  : [tl2, W2*C]    (lane-dense output rows, already NTHWC-ordered)
    z = jnp.dot(x_ref[...], kw2_ref[...], preferred_element_type=jnp.float32)   # [L1, W2*C]
    out = jnp.dot(m1_ref[...].astype(jnp.float32), z,
                  preferred_element_type=jnp.float32)                           # [tl2, W2*C]
    o_ref[...] = out.astype(o_ref.dtype)


def fused_upsample_matmul(m1, x_flat, kron_w2, out_dtype, row_cap=512):
    """out[n] = m1[n] @ (x_flat[n] @ kron_w2[n]), fused in one pallas_call.

    m1:      [N, L2, L1]        (L2 = T2*H2, L1 = T1*H1)
    x_flat:  [N, L1, W1*C]
    kron_w2: [N, W1*C, W2*C]
    returns: [N, L2, W2*C]
    """
    N, L2, L1 = m1.shape
    Nx, L1x, W1C = x_flat.shape
    Nk, W1Ck, W2C = kron_w2.shape
    assert N == Nx == Nk and L1 == L1x and W1C == W1Ck

    # Row tile: full L2 when small, else a 512-class 8-multiple tile; Pallas masks the
    # partial edge block (pl.cdiv grid), so no exact-divisibility fallback is needed.
    tl2 = L2 if L2 <= row_cap else row_cap
    grid = (N, pl.cdiv(L2, tl2))
    n_row_tiles = grid[1]

    flops = 2 * N * (n_row_tiles * L1 * W1C * W2C + L2 * L1 * W2C)
    out_isz = jnp.dtype(out_dtype).itemsize
    bytes_accessed = (m1.size * m1.dtype.itemsize
                      + x_flat.size * x_flat.dtype.itemsize
                      + kron_w2.size * kron_w2.dtype.itemsize
                      + N * L2 * W2C * out_isz)

    # Explicit VMEM budget: double-buffered blocks + f32 intermediates + headroom,
    # capped below v7x's 64 MiB physical VMEM.
    in_isz = jnp.dtype(m1.dtype).itemsize
    block_bytes = (tl2 * L1 + L1 * W1C + W1C * W2C) * in_isz + tl2 * W2C * out_isz
    f32_tmp = 4 * (L1 * W2C + tl2 * W2C + tl2 * L1)
    vmem_limit = int(min(max(2 * block_bytes + f32_tmp + (8 << 20), 32 << 20), 56 << 20))

    return pl.pallas_call(
        _fused_upsample_kernel,
        out_shape=jax.ShapeDtypeStruct((N, L2, W2C), out_dtype),
        grid=grid,
        in_specs=[
            pl.BlockSpec((None, tl2, L1), lambda n, i: (n, i, 0)),
            pl.BlockSpec((None, L1, W1C), lambda n, i: (n, 0, 0)),   # per-batch, not re-fetched
            pl.BlockSpec((None, W1C, W2C), lambda n, i: (n, 0, 0)),  # per-batch, not re-fetched
        ],
        out_specs=pl.BlockSpec((None, tl2, W2C), lambda n, i: (n, i, 0)),
        compiler_params=pltpu.CompilerParams(
            dimension_semantics=("parallel", "parallel"),
            vmem_limit_bytes=vmem_limit),
        cost_estimate=pl.CostEstimate(flops=flops, transcendentals=0,
                                      bytes_accessed=bytes_accessed),
    )(m1, x_flat, kron_w2)


# ----------------------------- module -----------------------------

class FastTrilinearInterpolation:
    """JAX/Pallas port of the PyTorch module ('matmul' / 'matmul-th-w' patch paths).

    Both methods use the same separable fused-matmul hot path (numerically equivalent to the
    dense 'matmul' path, with f32 accumulation throughout).
    """

    def __init__(self, method="matmul", compute_dtype=jnp.bfloat16):
        assert method in ("matmul", "matmul-th-w")
        self.method = method
        self.align_corners = False
        # compute_dtype is the MXU operand dtype (weights + x).  bf16 halves HBM operand
        # bytes; accumulation and the in-VMEM intermediate stay f32 (no double rounding).
        # Pass jnp.float32 (or None -> x.dtype) for exact f32.
        self.compute_dtype = compute_dtype

    def _build_axis_weights(self, x, idx, idx_max, size, scale, padding):
        """Per-axis 1-D interpolation weights: w0 [N,T2,T1], w1 [N,H2,H1], w2 [N,W2,W1]."""
        in_sizes = [size[d] // scale[d] for d in range(3)]
        out_sizes = list(size)
        in_patch_sizes = list(x.shape[1:4])
        out_patch_size = [out_sizes[d] // idx_max[d] + 2 * padding[d] for d in range(3)]
        in_padding = [(in_patch_sizes[d] - in_sizes[d] // idx_max[d]) // 2 for d in range(3)]
        out_padding = list(padding)

        idx_in, _ = compute_pixel_idx_3d(idx, idx_max, in_sizes, in_padding, clipped=False)
        idx_out, idx_out_mask = compute_pixel_idx_3d(idx, idx_max, out_sizes, out_padding,
                                                     clipped=False)
        idx_out_p = [
            jnp.clip(convert_index(idx_out[d], out_sizes[d], in_sizes[d],
                                   align_corners=self.align_corners),
                     0.0, in_sizes[d] - 1.0)
            for d in range(3)
        ]
        diff = [jnp.abs(idx_out_p[d][:, :, None] - idx_in[d][:, None, :].astype(jnp.float32))
                for d in range(3)]
        weights = [
            (1.0 - diff[d]) * (diff[d] <= 1.0).astype(jnp.float32)
            * idx_out_mask[d][:, :, None].astype(jnp.float32)
            for d in range(3)
        ]
        return weights, tuple(out_patch_size)

    def __call__(self, x, idx, idx_max, size, scale, padding, patch_mode=True):
        assert x.ndim == 5
        assert all(size[d] % scale[d] == 0 for d in range(3))
        N, T1, H1, W1, C = x.shape

        method = self.method if patch_mode else "interpolate"
        if method not in ("matmul", "matmul-th-w"):
            # TODO(synk): 'interpolate' (full-video trilinear resize + crop, patch_mode=False)
            # path is not implemented as a Pallas kernel.
            raise NotImplementedError(f"method={method}")

        (w0, w1, w2), (T2, H2, W2) = self._build_axis_weights(
            x, idx, idx_max, size, scale, padding)
        cdt = jnp.dtype(self.compute_dtype) if self.compute_dtype is not None else x.dtype

        # m1 = w0 (x) w1 : [N, T2*H2, T1*H1]   (tiny weight build, plain XLA)
        m1 = (w0[:, :, None, :, None] * w1[:, None, :, None, :]).reshape(N, T2 * H2, T1 * H1)

        # kron_w2 = w2^T (x) I_C : [N, W1*C, W2*C] so the W contraction is a plain
        # right-matmul with C riding along in the lanes (no transposes anywhere).
        # TODO(synk): for very large C this operand grows as C^2; a two-stage kernel with the
        # W-contraction done per-row would be preferable in that regime.
        eye = jnp.eye(C, dtype=jnp.float32)
        kron_w2 = (w2.transpose(0, 2, 1)[:, :, None, :, None]
                   * eye[None, None, :, None, :]).reshape(N, W1 * C, W2 * C)

        # Free reshape of the input (contiguous dims merged): [N, T1*H1, W1*C].
        x_flat = x.reshape(N, T1 * H1, W1 * C)

        out = fused_upsample_matmul(m1.astype(cdt), x_flat.astype(cdt), kron_w2.astype(cdt),
                                    out_dtype=x.dtype)

        # Free reshape back to NTHWC: [N, T2*H2, W2*C] -> [N, T2, H2, W2, C].
        return out.reshape(N, T2, H2, W2, C)


# ----------------------------- demo / self-check -----------------------------

if __name__ == "__main__":
    key = jax.random.PRNGKey(0)

    # Small, consistent configuration:
    #   full output video size = (4, 16, 16), scale = (2, 2, 2)  -> input video size (2, 8, 8)
    #   idx_max = (1, 2, 2) patches, output padding = (0, 1, 1), input padding = (0, 1, 1)
    #   -> input patch [N, 2, 6, 6, C], output patch [N, 4, 10, 10, C]
    N, C = 2, 8
    size = (4, 16, 16)
    scale = (2, 2, 2)
    idx_max = (1, 2, 2)
    padding = (0, 1, 1)
    in_sizes = tuple(size[d] // scale[d] for d in range(3))
    in_padding = (0, 1, 1)
    in_patch = tuple(in_sizes[d] // idx_max[d] + 2 * in_padding[d] for d in range(3))  # (2, 6, 6)

    kx, _ = jax.random.split(key)
    x = jax.random.normal(kx, (N,) + in_patch + (C,), dtype=jnp.float32)
    idx = jnp.array([[0, 0, 0], [0, 1, 1]], dtype=jnp.int32)

    # Exact-f32 operands -> strict check against the dense-M 'matmul' reference.
    module_f32 = FastTrilinearInterpolation(method="matmul", compute_dtype=jnp.float32)
    out = jax.block_until_ready(
        module_f32(x, idx, idx_max, size, scale, padding, patch_mode=True))

    (w0, w1, w2), (T2, H2, W2) = module_f32._build_axis_weights(
        x, idx, idx_max, size, scale, padding)
    M = (w0[:, :, None, None, :, None, None]
         * w1[:, None, :, None, None, :, None]
         * w2[:, None, None, :, None, None, :]).reshape(N, T2 * H2 * W2, -1)
    ref = jnp.einsum("nij,njc->nic", M, x.reshape(N, -1, C)).reshape(N, T2, H2, W2, C)

    assert out.shape == (N, T2, H2, W2, C), out.shape
    assert jnp.allclose(out, ref, atol=1e-4, rtol=1e-4), "f32 mismatch vs dense reference"

    # Default bf16 operands (halves HBM bytes; f32 accumulation, f32 intermediate) -- looser
    # tolerance since x itself is rounded to bf16 before the MXU.
    module_bf16 = FastTrilinearInterpolation(method="matmul-th-w")   # default compute_dtype=bf16
    out_bf16 = jax.block_until_ready(
        module_bf16(x, idx, idx_max, size, scale, padding, patch_mode=True))
    assert out_bf16.shape == ref.shape
    assert jnp.allclose(out_bf16.astype(jnp.float32), ref, atol=5e-2, rtol=5e-2), \
        "bf16 mismatch vs dense reference"

    print("KERNEL_OK")
</pallas_src>

<mosaic_0001>
module attributes {stable_mosaic.version = 11 : i64} {
  func.func @_fused_upsample_kernel(%arg0: i32, %arg1: i32, %arg2: memref<1x40x12xf32, #tpu.memory_space<vmem>>, %arg3: memref<1x12x48xf32, #tpu.memory_space<vmem>>, %arg4: memref<1x48x80xf32, #tpu.memory_space<vmem>>, %arg5: memref<1x40x80xf32, #tpu.memory_space<vmem>>) attributes {dimension_semantics = [#tpu.dimension_semantics<parallel>, #tpu.dimension_semantics<parallel>], iteration_bounds = array<i64: 2, 1>, scalar_prefetch = 0 : i64, scratch_operands = 0 : i64, tpu.core_type = #tpu.core_type<tc>, window_params = [{transform_indices = @transform_0, window_bounds = array<i64: 1, 40, 12>}, {transform_indices = @transform_1, window_bounds = array<i64: 1, 12, 48>}, {transform_indices = @transform_2, window_bounds = array<i64: 1, 48, 80>}, {transform_indices = @transform_3, window_bounds = array<i64: 1, 40, 80>}]} {
    %c0 = arith.constant 0 : index
    %c0_0 = arith.constant 0 : index
    %c0_1 = arith.constant 0 : index
    %0 = vector.load %arg3[%c0, %c0_0, %c0_1] : memref<1x12x48xf32, #tpu.memory_space<vmem>>, vector<1x12x48xf32>
    %1 = vector.shape_cast %0 : vector<1x12x48xf32> to vector<12x48xf32>
    %c0_2 = arith.constant 0 : index
    %c0_3 = arith.constant 0 : index
    %c0_4 = arith.constant 0 : index
    %2 = vector.load %arg4[%c0_2, %c0_3, %c0_4] : memref<1x48x80xf32, #tpu.memory_space<vmem>>, vector<1x48x80xf32>
    %3 = vector.shape_cast %2 : vector<1x48x80xf32> to vector<48x80xf32>
    %cst = arith.constant dense<0.000000e+00> : vector<12x80xf32>
    %4 = tpu.matmul %1, %3, %cst {dimension_numbers = #tpu.dot_dimension_numbers<[1], [0], [0], [1], [0, 0, 1, 1], [], []>} : vector<12x48xf32>, vector<48x80xf32>, vector<12x80xf32> -> vector<12x80xf32>
    %c0_5 = arith.constant 0 : index
    %c0_6 = arith.constant 0 : index
    %c0_7 = arith.constant 0 : index
    %5 = vector.load %arg2[%c0_5, %c0_6, %c0_7] : memref<1x40x12xf32, #tpu.memory_space<vmem>>, vector<1x40x12xf32>
    %6 = vector.shape_cast %5 : vector<1x40x12xf32> to vector<40x12xf32>
    %cst_8 = arith.constant dense<0.000000e+00> : vector<40x80xf32>
    %7 = tpu.matmul %6, %4, %cst_8 {dimension_numbers = #tpu.dot_dimension_numbers<[1], [0], [0], [1], [0, 0, 1, 1], [], []>} : vector<40x12xf32>, vector<12x80xf32>, vector<40x80xf32> -> vector<40x80xf32>
    %c0_9 = arith.constant 0 : index
    %c0_10 = arith.constant 0 : index
    %c0_11 = arith.constant 0 : index
    %8 = vector.load %arg5[%c0_9, %c0_10, %c0_11] : memref<1x40x80xf32, #tpu.memory_space<vmem>>, vector<1x40x80xf32>
    %9 = vector.shape_cast %8 : vector<1x40x80xf32> to vector<40x80xf32>
    %10 = vector.shape_cast %7 : vector<40x80xf32> to vector<1x40x80xf32>
    tpu.vector_store %arg5[%c0_9, %c0_10, %c0_11], %10 {strides = array<i32>} : memref<1x40x80xf32, #tpu.memory_space<vmem>>, vector<1x40x80xf32>,
    return
  }
  func.func @transform_0(%arg0: i32, %arg1: i32) -> (i32, i32, i32) {
    %c0_i32 = arith.constant 0 : i32
    %c0_i32_0 = arith.constant 0 : i32
    return %arg0, %arg1, %c0_i32 : i32, i32, i32
  }
  func.func @transform_1(%arg0: i32, %arg1: i32) -> (i32, i32, i32) {
    %c0_i32 = arith.constant 0 : i32
    %c0_i32_0 = arith.constant 0 : i32
    %c0_i32_1 = arith.constant 0 : i32
    return %arg0, %c0_i32, %c0_i32_0 : i32, i32, i32
  }
  func.func @transform_2(%arg0: i32, %arg1: i32) -> (i32, i32, i32) {
    %c0_i32 = arith.constant 0 : i32
    %c0_i32_0 = arith.constant 0 : i32
    %c0_i32_1 = arith.constant 0 : i32
    return %arg0, %c0_i32, %c0_i32_0 : i32, i32, i32
  }
  func.func @transform_3(%arg0: i32, %arg1: i32) -> (i32, i32, i32) {
    %c0_i32 = arith.constant 0 : i32
    %c0_i32_0 = arith.constant 0 : i32
    return %arg0, %arg1, %c0_i32 : i32, i32, i32
  }
}

</mosaic_0001>

<bundles_post_ra>
// kernel: tpu_custom_call.1
= control target key start
LH: loop header
LB: loop body
LE: loop exit
PB: predicated region body
PF: predicated region fallthrough
CT: control target
= control target key end

     0   :  { %8 = vsyncpa [#allocation3], 0  ;;  %s968_s0 = inlined_call_operand.vmem [shape: f32[2,40,12], index: 0, kind: input, shape index: {}]   ;;  %s969_s1 = inlined_call_operand.vmem [shape: f32[2,12,48], index: 1, kind: input, shape index: {}]   ;;  %s970_s2 = inlined_call_operand.vmem [shape: f32[2,48,80], index: 2, kind: input, shape index: {}]   ;;  %s971_s3 = inlined_call_operand.hbm [shape: f32[2,40,80], index: 3, kind: output, shape index: {}]  }
   0x1   :  { %10 = vsyncpa [#allocation3 + $0x1], 0  ;;  %s830_s12 = smov 0   ;;  %s832_s13 = smov 0  }
   0x2   :  { %s834_s14 = smov 0   ;;  %s836_s15 = smov 0  }
   0x3   :  { %s838_s16 = smov 0   ;;  %s840_s17 = smov 0  }
   0x4 LB: > { %s570_s18 = sadd.s32 4294967295, %s801_s17   ;;  %s571_s19 = sadd.s32 4294967294, %s801_s17   ;;  %s801_s17 = sphi %s840_s17, %s16_s17   ;;  %s797_s16 = sphi %s838_s16, %s978_s16   ;;  %s793_s15 = sphi %s836_s15, %s977_s15   ;;  %s789_s14 = sphi %s834_s14, %s976_s14   ;;  %s785_s13 = sphi %s832_s13, %s975_s13   ;;  %s781_s12 = sphi %s830_s12, %s974_s12  }
   0x5   : > { %s28_s20 = sadd.s32 1, %s797_s16  ;;  %s117_s21 = sadd.s32 1, %s789_s14 }
   0x6   : > { %p30_p0 = scmp.ge.s32.totalorder %s28_s20, 2  ;;  %p127_p1 = scmp.ne.s32.totalorder %s789_s14, %s785_s13 }
   0x7   : > { %p128_p2 = scmp.eq.s32.totalorder %s570_s18, 1  ;;  %p133_p3 = scmp.ne.s32.totalorder %s785_s13, %s781_s12 }
   0x8   : > { %s980_s20 = smov (%p30_p0, %s28_s20), 0  ;;  %p134_p5 = scmp.eq.s32.totalorder %s571_s19, 1 }
   0x9   : > { %p870_p4 = por %p128_p2, %p127_p1  ;;  %s112_s23 = ssub.s32 %s797_s16, %s980_s20 }
   0xa   : > { %p574_p6 = scmp.ge.s32.totalorder %s801_s17, 1  ;;  %p115_p7 = scmp.eq.s32.totalorder %s112_s23, 0 }
   0xb   : > { %p877_p8 = por %p134_p5, %p133_p3  ;;  %p181_p9 = scmp.lt.s32.totalorder %s801_s17, 3 }
   0xc   : > { %s883_s25 = scalar_select %p115_p7, %s789_s14, %s117_s21  }
   0xd   : > { %p182_p10 = pnand %p574_p6, %p181_p9 }
   0xe   : > { %p220_p11 = scmp.lt.s32.totalorder (!%p182_p10), %s793_s15, 1  ;;  %vm248_vm0 = vcmask (!%p182_p10), 392192   ;;  %v803_v11 = vmov (!%p182_p10), 0.0|0.0   ;;  %vm804_vm1 = vmmov (!%p182_p10), 0   ;;  %v805_v12 = vmov (!%p182_p10), 0.0   ;;  %s216_s18 = sand.u32 (!%p182_p10), 1, %s785_s13  }
   0xf   : > { %185 = sbr.rel (%p182_p10) target bundleno = 499 (0x1f3), region = 32  ;;  %656 = vmatprep.subr.bf16.mxu1 (!%p182_p10), %v803_v11  ;;  %628 = vmatprep.mubr.msk.f32.mxu1 (!%p182_p10), %vm804_vm1, %v805_v12  ;;  %vm351_vm2 = vcmask (!%p182_p10), 1043456   ;;  %vm806_vm3 = vmmov (!%p182_p10), 1   ;;  %vm335_vm5 = vcmask (!%p182_p10), 97280   ;;  %vm445_vm6 = vcmask (!%p182_p10), 654336  }
  0x10   : > { %vm654_vm4 = vmpackc.low (!%p182_p10), %vm351_vm2, %vm806_vm3  ;;  %s658_s19 = smul.u32 (!%p182_p10), 40, %s216_s18 }
  0x11   : > { %s661_s23 = smul.u32 (!%p182_p10), 640, %s793_s15 }
  0x12   : > { %s218_s21 = scalar_lea.vmem (!%p182_p10), [#allocation2], %s658_s19 }
  0x13   : > { %s919_s29 = scalar_lea.hbm (!%p182_p10), %s971_s3, %s661_s23 }
  0x16   : > { %s887_s26 = scalar_select %p220_p11, %s793_s15, 1 }
  0x17   : > { %s922_s15 = scalar_lea.sflag [#allocation3], %s216_s18 }
  0x18   : > { %s660_s27 = smul.u32 48, %s887_s26  ;;  %s590_s28 = sshll.u32 %s887_s26, 4 }
  0x19   : > { %s233_s4 = scalar_lea.vmem %s969_s1, %s590_s28  ;;  %s659_s8 = smul.u32 40, %s887_s26 }
  0x1a   : > { %s238_s7 = scalar_lea.vmem %s970_s2, %s660_s27  ;;  %v240_v0 = vld [vmem:[%s233_s4] sm:$0xff]  ;;  %v241_v10 = vld [vmem:[%s233_s4 + $0x8] sm:$0xf]  ;;  %s467_s26 = sshll.u32 %s218_s21, 4  ;;  %s914_s26 = int_to_ptr.vmem [resolvable:$true] %s467_s26 }
  0x1b   : > { %v242_v1 = vld [vmem:[%s238_s7] sm:$0xff]  ;;  %v243_v2 = vld [vmem:[%s238_s7 + $0x8] sm:$0xff]  ;;  %v244_v3 = vld [vmem:[%s238_s7 + $0x10] sm:$0xff]  ;;  %618 = vmatprep.mubr.msk.f32.mxu0 %vm248_vm0, %v240_v0  ;;  %s227_s11 = scalar_lea.vmem %s968_s0, %s659_s8  ;;  %s723_s30 = scalar_lea.vmem %s914_s26, 640 }
  0x1c   : > { %v640_v4 = vpack.c.bf16 %v243_v2, %v242_v1  ;;  %v245_v5 = vld [vmem:[%s238_s7 + $0x18] sm:$0xff]  ;;  %v246_v7 = vld [vmem:[%s238_s7 + $0x20] sm:$0xff]  ;;  %v247_v8 = vld [vmem:[%s238_s7 + $0x28] sm:$0xff]  ;;  %p724_p12 = scmp.ne.s32.totalorder %s914_s26, %s723_s30  ;;  %s807_s4 = smov [#allocation2]  }
  0x1d   : > { %v644_v6 = vpack.c.bf16 %v245_v5, %v244_v3  ;;  %v648_v9 = vpack.c.bf16 %v247_v8, %v246_v7  ;;  %v331_v16 = vld [vmem:[%s227_s11 + $0x8] sm:$0xff]  ;;  %v330_v17 = vld [vmem:[%s227_s11] sm:$0xff]  ;;  %v332_v18 = vld [vmem:[%s227_s11 + $0x10] sm:$0xff]  ;;  %s727_s5 = sshll.u32 %s807_s4, 4  ;;  %s728_s5 = int_to_ptr.vmem [resolvable:$false] %s727_s5 }
  0x1e   : > { %641 = vmatprep.subr.bf16.mxu0 %v640_v4  ;;  %v333_v19 = vld [vmem:[%s227_s11 + $0x18] sm:$0xff]  ;;  %v334_v20 = vld [vmem:[%s227_s11 + $0x20] sm:$0xff]  ;;  %p725_p13 = pnand %p724_p12, %p870_p4  ;;  %s729_s6 = scalar_lea.vmem %s728_s5, 1280 }
  0x1f   : > { %643 = vmatpush3.bf16.msra.mxu0 %v640_v4  ;;  %p730_p1 = scmp.lt.s32.totalorder %s914_s26, %s728_s5  ;;  %p731_p2 = scmp.lt.s32.totalorder %s729_s6, %s723_s30 }
  0x20   : > { %645 = vmatprep.subr.bf16.mxu0 %v644_v6  ;;  %p726_p0 = pneg %p725_p13 }
  0x21   : > { %p732_p3 = por %p731_p2, %p730_p1 }
  0x23   : > { %647 = vmatpush3.bf16.msra.mxu0 %v644_v6  ;;  %p733_p5 = pnand %p732_p3, %p726_p0 }
  0x24   : > { %649 = vmatprep.subr.bf16.mxu0 %v648_v9 }
  0x27   : > { %651 = vmatpush3.bf16.msra.mxu0 %v648_v9 }
  0x28   : > { %652 = vmatprep.subr.bf16.mxu0 %v803_v11 }
  0x2a   : > { %619 = vmatmul.mubr.msk.f32.vlgmr.msra.gmra.mrb[0].mxu0 %vm248_vm0, %v241_v10 }
  0x2b   : > { %625 = vmatprep.mubr.msk.f32.mxu0 %vm804_vm1, %v805_v12 }
  0xfd   : > { %v620_v13 = vpop.f32.mrb[0].mxu0 }
  0xfe   : > { %v321_v14 = vpop.f32.mrb[1].mxu0 }
  0xff   : > { %v653_v15 = vpack.c.bf16 %v620_v13, %v321_v14 }
 0x101   : > { %655 = vmatpush3.bf16.msk.msra.mxu0 %vm654_vm4, %v653_v15  ;;  %657 = vmatpush3.bf16.msk.msra.mxu1 %vm654_vm4, %v653_v15 }
 0x104   : > { %629 = vmatmul.mubr.msk.f32.vlgmr.msra.gmra.mrb[0].mxu1 %vm335_vm5, %v331_v16  ;;  %626 = vmatmul.mubr.msk.f32.vlgmr.msra.gmra.mrb[2].mxu0 %vm335_vm5, %v330_v17 }
 0x105   : > { %631 = vmatprep.mubr.msk.f32.mxu1 %vm804_vm1, %v805_v12 }
 0x108   : > { %632 = vmatmul.mubr.msk.f32.gmra.mrb[2].mxu1 %vm335_vm5, %v332_v18 }
 0x109   : > { %634 = vmatprep.mubr.msk.f32.mxu1 %vm804_vm1, %v805_v12 }
 0x10c   : > { %635 = vmatmul.mubr.msk.f32.gmra.mrb[4].mxu1 %vm335_vm5, %v333_v19 }
 0x10d   : > { %637 = vmatprep.mubr.msk.f32.mxu1 %vm804_vm1, %v805_v12 }
 0x110   : > { %638 = vmatmul.mubr.msk.f32.gmra.mrb[6].mxu1 %vm335_vm5, %v334_v20 }
 0x1d7   : > { %v426_v21 = vpop.f32.mrb[0].mxu1  ;;  %v421_v22 = vpop.f32.mrb[2].mxu0 }
 0x1d8   : > { %447 = vst.msk [vmem:[%s218_s21 + $0x8] sm:$0xff] %vm445_vm6, %v426_v21  ;;  %v630_v23 = vpop.f32.mrb[1].mxu1  ;;  %446 = vst.msk [vmem:[%s218_s21] sm:$0xff] %vm445_vm6, %v421_v22  ;;  %v627_v24 = vpop.f32.mrb[3].mxu0 }
 0x1db   : > { %v431_v25 = vpop.f32.mrb[2].mxu1 }
 0x1dc   : > { %448 = vst.msk [vmem:[%s218_s21 + $0x10] sm:$0xff] %vm445_vm6, %v431_v25  ;;  %v633_v26 = vpop.f32.mrb[3].mxu1 }
 0x1df   : > { %v436_v27 = vpop.f32.mrb[4].mxu1 }
 0x1e0   : > { %449 = vst.msk [vmem:[%s218_s21 + $0x18] sm:$0xff] %vm445_vm6, %v436_v27  ;;  %v636_v28 = vpop.f32.mrb[5].mxu1 }
 0x1e3   : > { %v441_v29 = vpop.f32.mrb[6].mxu1 }
 0x1e4   : > { %450 = vst.msk [vmem:[%s218_s21 + $0x20] sm:$0xff] %vm445_vm6, %v441_v29  ;;  %v639_v30 = vpop.f32.mrb[7].mxu1 }
 0x1e5   : > { %736 = shalt.err (!%p733_p5)
}
 0x1e6   : > { %s737_s7 = scalar_lea.hbm %s919_s29, 640  ;;  %s741_s10 = scalar_lea.hbm %s971_s3, 1280 }
 0x1e7   : > { %p738_p6 = scmp.ne.s32.totalorder %s919_s29, %s737_s7  ;;  %p742_p10 = scmp.lt.u32.totalorder %s919_s29, %s971_s3 }
 0x1e8   : > { %p743_p11 = scmp.lt.u32.totalorder %s741_s10, %s737_s7  ;;  %p745_p13 = scmp.lt.u32.totalorder %s737_s7, %s919_s29 }
 0x1e9   : > { %p739_p7 = pnand %p738_p6, %p870_p4 }
 0x1ea   : > { %p744_p12 = por %p743_p11, %p742_p10 }
 0x1eb   : > { %p740_p9 = pneg %p739_p7 }
 0x1ec   : > { %p746_p0 = por %p745_p13, %p744_p12 }
 0x1ee   : > { %p747_p1 = pnand %p746_p0, %p740_p9 }
 0x1f0   : > { %750 = shalt.err (!%p747_p1)
}
 0x1f1   : > { %s808_s19 = smov 128   ;;  %s809_s21 = smov 8  }
 0x1f2   : > { %662 = dma.vmem_to_hbm [thread:$0]  (%p870_p4), %s914_s26, 640, %s919_s29, %s922_s15, %s808_s19, %s808_s19, %s809_s21  }
 0x1f3 PF: > { %p668_p2 = scmp.ge.s32.totalorder %s801_s17, 2  ;;  %s482_s23 = sand.u32 1, %s781_s12  }
 0x1f4   : > { %s483_s27 = scalar_lea.sflag [#allocation3], %s482_s23 }
 0x1f5   : > { %p665_p3 = pnand %p668_p2, %p877_p8 }
 0x1f7   : > { %776 = dma.done.wait (!%p665_p3), %s483_s27, 640  }
 0x1f8   : > { %778 = vsyncadd (!%p665_p3), %s483_s27, 4294966656  ;;  %s16_s17 = sadd.s32 1, %s801_s17   ;;  %s974_s12 = smov %s785_s13 }
 0x1f9   : > { %p13_p5 = scmp.ge.s32.totalorder %s16_s17, 4   ;;  %s975_s13 = smov %s789_s14 }
 0x1fa   : > { %s976_s14 = smov %s883_s25  ;;  %s977_s15 = smov %s797_s16 }
 0x1fb   : > { %s978_s16 = smov %s980_s20  ;;  %15 = sbr.rel (!%p13_p5) target bundleno = 4 (0x4), region = 73 }
 0x202   :  { %488 = vsyncpa [#allocation3], 1 }
 0x203   :  { %490 = vsyncpa [#allocation3 + $0x1], 1 }

</bundles_post_ra>
